<compile_context>
chip_gen: v7x
topology: tpu7x:2x2x1
jax: 0.10.0
libtpu: 0.0.40
codegen_flags: <defaults>
</compile_context>

<pallas_src>
import jax
import jax.numpy as jnp
import numpy as np
from jax.experimental import pallas as pl
from jax.experimental.pallas import tpu as pltpu


def _softmax_lastdim(x):
    m = jnp.max(x, axis=-1, keepdims=True)
    e = jnp.exp(x - m)
    return e / jnp.sum(e, axis=-1, keepdims=True)


def _coattn_kernel(v_ref, q_ref, wbv_ref, wq_ref, wh_ref, out_ref):
    f32 = jnp.float32
    Wbv = wbv_ref[...]   # (H+K, H)  == stacked [W_b; W_v]
    Wq = wq_ref[...]     # (K, H)
    Wh = wh_ref[...]     # (2, K)    == stacked [w_hv^T; w_hq^T]

    B, H, R = v_ref.shape
    L = q_ref.shape[1]
    K = Wq.shape[0]
    W_out = out_ref.shape[1]

    # standard (NN) matmul and matmul with transposed RHS (NT), both on the MXU
    dot = lambda a, b: jax.lax.dot_general(
        a, b, (((1,), (0,)), ((), ())), preferred_element_type=f32)
    dot_nt = lambda a, b: jax.lax.dot_general(
        a, b, (((1,), (1,)), ((), ())), preferred_element_type=f32)

    rows = []
    for b in range(B):          # B is small & static -> unrolled, plain 2-D matmuls
        V = v_ref[b]            # (H, R)
        Q = q_ref[b]            # (L, H)

        # fused  [W_b; W_v] @ V  -> slice back out
        WbvV = dot(Wbv, V)      # (H+K, R)
        WbV = WbvV[:H, :]       # (H, R)
        WvV = WbvV[H:, :]       # (K, R)

        C = dot(Q, WbV)         # (L, R)    Q @ (W_b V)
        WqQt = dot_nt(Wq, Q)    # (K, L)    W_q @ Q^T

        H_v = jnp.tanh(WvV + dot(WqQt, C))       # (K, R)
        H_q = jnp.tanh(WqQt + dot_nt(WvV, C))    # (K, L)

        # fused score matmul: (2, K) @ (K, R+L) -> both score rows in one MXU pass
        Hcat = jnp.concatenate([H_v, H_q], axis=-1)   # (K, R+L)
        S = dot(Wh, Hcat)                             # (2, R+L)
        s_v = S[0:1, :R]        # (1, R)   w_hv^T @ H_v
        s_q = S[1:2, R:]        # (1, L)   w_hq^T @ H_q

        a_v = _softmax_lastdim(s_v)                   # (1, R)
        a_q = _softmax_lastdim(s_q)                   # (1, L)

        # masked_softmax: reference fills every position where a_q != 0 with -1e9
        # (mask = a_q.eq(0); masked_fill(mask == 0, -1e9)), then softmaxes again.
        masked_scores = jnp.where(a_q == 0.0, a_q, jnp.full_like(a_q, -1.0e9))
        masked_a_q = _softmax_lastdim(masked_scores)  # (1, L)

        vfeat = dot_nt(a_v, V)          # (1, H)   a_v @ V^T
        qfeat = dot(masked_a_q, Q)      # (1, H)   masked_a_q @ Q

        row = jnp.concatenate([a_v, masked_a_q, vfeat, qfeat], axis=-1)  # (1, R+L+2H)
        pad_w = W_out - (R + L + 2 * H)
        if pad_w > 0:
            row = jnp.concatenate([row, jnp.zeros((1, pad_w), f32)], axis=-1)
        rows.append(row)

    # single lane-dense (B, 128) store -> one unmasked writeback DMA
    out_ref[...] = jnp.concatenate(rows, axis=0)


def parallel_co_attention(V, Q, W_b, W_v, W_q, w_hv, w_hq):
    B, H, R = V.shape
    _, L, _ = Q.shape
    K = W_v.shape[0]

    packed = R + L + 2 * H
    W_out = max(128, ((packed + 127) // 128) * 128)   # lane-dense output width

    # one-time host-side operand fusion (tiny, reused every call)
    W_bv = jnp.concatenate([W_b, W_v], axis=0)            # (H+K, H)
    W_h = jnp.concatenate([w_hv.T, w_hq.T], axis=0)       # (2, K)

    grid_spec = pltpu.PrefetchScalarGridSpec(
        num_scalar_prefetch=0,
        grid=(1,),  # whole problem in one invocation; everything fits in VMEM
        in_specs=[
            pl.BlockSpec((B, H, R), lambda i: (0, 0, 0)),   # V
            pl.BlockSpec((B, L, H), lambda i: (0, 0, 0)),   # Q
            pl.BlockSpec((H + K, H), lambda i: (0, 0)),     # [W_b; W_v]
            pl.BlockSpec((K, H), lambda i: (0, 0)),         # W_q
            pl.BlockSpec((2, K), lambda i: (0, 0)),         # [w_hv^T; w_hq^T]
        ],
        out_specs=pl.BlockSpec((B, W_out), lambda i: (0, 0)),
    )

    out = pl.pallas_call(
        _coattn_kernel,
        out_shape=jax.ShapeDtypeStruct((B, W_out), jnp.float32),
        grid_spec=grid_spec,
        compiler_params=pltpu.CompilerParams(dimension_semantics=("arbitrary",)),
    )(V, Q, W_bv, W_q, W_h)

    a_v = out[:, None, :R]                            # (B, 1, R)
    masked_a_q = out[:, None, R:R + L]                # (B, 1, L)
    vfeat = out[:, R + L:R + L + H]                   # (B, H)
    qfeat = out[:, R + L + H:R + L + 2 * H]           # (B, H)
    return a_v, masked_a_q, vfeat, qfeat


def reference(V, Q, W_b, W_v, W_q, w_hv, w_hq):
    """Pure-JAX mirror of the PyTorch forward, for validation."""
    WbV = jnp.einsum('ij,bjr->bir', W_b, V)
    C = jnp.einsum('blh,bhr->blr', Q, WbV)
    WvV = jnp.einsum('kh,bhr->bkr', W_v, V)
    WqQt = jnp.einsum('kh,blh->bkl', W_q, Q)
    H_v = jnp.tanh(WvV + jnp.einsum('bkl,blr->bkr', WqQt, C))
    H_q = jnp.tanh(WqQt + jnp.einsum('bkr,blr->bkl', WvV, C))
    a_v = jax.nn.softmax(jnp.einsum('kx,bkr->bxr', w_hv, H_v), axis=2)
    a_q = jax.nn.softmax(jnp.einsum('kx,bkl->bxl', w_hq, H_q), axis=2)
    scores = a_q[:, 0, :]
    masked = jnp.where(scores == 0.0, scores, -1.0e9)
    masked_a_q = jax.nn.softmax(masked, axis=-1)[:, None, :]
    v = jnp.einsum('bxr,bhr->bxh', a_v, V)[:, 0, :]
    q = jnp.einsum('bxl,blh->bxh', masked_a_q, Q)[:, 0, :]
    return a_v, masked_a_q, v, q


if __name__ == "__main__":
    B, hidden_dim, co_attention_dim = 2, 32, 16
    region_num, seq_len = 16, 8

    key = jax.random.PRNGKey(0)
    k_v, k_q, k_wb, k_wv, k_wq, k_hv, k_hq = jax.random.split(key, 7)

    V = jax.random.normal(k_v, (B, hidden_dim, region_num), dtype=jnp.float32)
    Q = jax.random.normal(k_q, (B, seq_len, hidden_dim), dtype=jnp.float32)

    # deterministic "torch.randn"-style parameter init
    W_b = jax.random.normal(k_wb, (hidden_dim, hidden_dim), dtype=jnp.float32)
    W_v = jax.random.normal(k_wv, (co_attention_dim, hidden_dim), dtype=jnp.float32)
    W_q = jax.random.normal(k_wq, (co_attention_dim, hidden_dim), dtype=jnp.float32)
    w_hv = jax.random.normal(k_hv, (co_attention_dim, 1), dtype=jnp.float32)
    w_hq = jax.random.normal(k_hq, (co_attention_dim, 1), dtype=jnp.float32)

    outs = parallel_co_attention(V, Q, W_b, W_v, W_q, w_hv, w_hq)
    outs = jax.block_until_ready(outs)

    refs = reference(V, Q, W_b, W_v, W_q, w_hv, w_hq)
    for got, want in zip(outs, refs):
        np.testing.assert_allclose(np.asarray(got), np.asarray(want),
                                   rtol=1e-4, atol=1e-4)

    print("KERNEL_OK")
</pallas_src>

<mosaic_0001>
module attributes {stable_mosaic.version = 11 : i64} {
  func.func @_coattn_kernel(%arg0: i32, %arg1: memref<2x32x16xf32, #tpu.memory_space<vmem>>, %arg2: memref<2x8x32xf32, #tpu.memory_space<vmem>>, %arg3: memref<48x32xf32, #tpu.memory_space<vmem>>, %arg4: memref<16x32xf32, #tpu.memory_space<vmem>>, %arg5: memref<2x16xf32, #tpu.memory_space<vmem>>, %arg6: memref<2x128xf32, #tpu.memory_space<vmem>>) attributes {dimension_semantics = [#tpu.dimension_semantics<arbitrary>], iteration_bounds = array<i64: 1>, scalar_prefetch = 0 : i64, scratch_operands = 0 : i64, tpu.core_type = #tpu.core_type<tc>, window_params = [{pipeline_mode = #tpu.pipeline_mode<synchronous>, transform_indices = @transform_0, window_bounds = array<i64: 2, 32, 16>}, {pipeline_mode = #tpu.pipeline_mode<synchronous>, transform_indices = @transform_1, window_bounds = array<i64: 2, 8, 32>}, {pipeline_mode = #tpu.pipeline_mode<synchronous>, transform_indices = @transform_2, window_bounds = array<i64: 48, 32>}, {pipeline_mode = #tpu.pipeline_mode<synchronous>, transform_indices = @transform_3, window_bounds = array<i64: 16, 32>}, {pipeline_mode = #tpu.pipeline_mode<synchronous>, transform_indices = @transform_4, window_bounds = array<i64: 2, 16>}, {pipeline_mode = #tpu.pipeline_mode<synchronous>, transform_indices = @transform_5, window_bounds = array<i64: 2, 128>}]} {
    %c0 = arith.constant 0 : index
    %c0_0 = arith.constant 0 : index
    %0 = vector.load %arg3[%c0, %c0_0] : memref<48x32xf32, #tpu.memory_space<vmem>>, vector<48x32xf32>
    %c0_1 = arith.constant 0 : index
    %c0_2 = arith.constant 0 : index
    %1 = vector.load %arg4[%c0_1, %c0_2] : memref<16x32xf32, #tpu.memory_space<vmem>>, vector<16x32xf32>
    %c0_3 = arith.constant 0 : index
    %c0_4 = arith.constant 0 : index
    %2 = vector.load %arg5[%c0_3, %c0_4] : memref<2x16xf32, #tpu.memory_space<vmem>>, vector<2x16xf32>
    %c0_5 = arith.constant 0 : index
    %c0_6 = arith.constant 0 : index
    %c0_7 = arith.constant 0 : index
    %3 = vector.load %arg1[%c0_5, %c0_6, %c0_7] : memref<2x32x16xf32, #tpu.memory_space<vmem>>, vector<1x32x16xf32>
    %4 = vector.shape_cast %3 : vector<1x32x16xf32> to vector<32x16xf32>
    %c0_8 = arith.constant 0 : index
    %c0_9 = arith.constant 0 : index
    %c0_10 = arith.constant 0 : index
    %5 = vector.load %arg2[%c0_8, %c0_9, %c0_10] : memref<2x8x32xf32, #tpu.memory_space<vmem>>, vector<1x8x32xf32>
    %6 = vector.shape_cast %5 : vector<1x8x32xf32> to vector<8x32xf32>
    %cst = arith.constant dense<0.000000e+00> : vector<48x16xf32>
    %7 = tpu.matmul %0, %4, %cst {dimension_numbers = #tpu.dot_dimension_numbers<[1], [0], [0], [1], [0, 0, 1, 1], [], []>} : vector<48x32xf32>, vector<32x16xf32>, vector<48x16xf32> -> vector<48x16xf32>
    %8 = vector.extract_strided_slice %7 {offsets = [0, 0], sizes = [32, 16], strides = [1, 1]} : vector<48x16xf32> to vector<32x16xf32>
    %9 = vector.extract_strided_slice %7 {offsets = [32, 0], sizes = [16, 16], strides = [1, 1]} : vector<48x16xf32> to vector<16x16xf32>
    %cst_11 = arith.constant dense<0.000000e+00> : vector<8x16xf32>
    %10 = tpu.matmul %6, %8, %cst_11 {dimension_numbers = #tpu.dot_dimension_numbers<[1], [0], [0], [1], [0, 0, 1, 1], [], []>} : vector<8x32xf32>, vector<32x16xf32>, vector<8x16xf32> -> vector<8x16xf32>
    %cst_12 = arith.constant dense<0.000000e+00> : vector<16x8xf32>
    %11 = tpu.matmul %1, %6, %cst_12 {dimension_numbers = #tpu.dot_dimension_numbers<[1], [1], [0], [0], [0, 0, 1, 0], [], []>} : vector<16x32xf32>, vector<8x32xf32>, vector<16x8xf32> -> vector<16x8xf32>
    %cst_13 = arith.constant dense<0.000000e+00> : vector<16x16xf32>
    %12 = tpu.matmul %11, %10, %cst_13 {dimension_numbers = #tpu.dot_dimension_numbers<[1], [0], [0], [1], [0, 0, 1, 1], [], []>} : vector<16x8xf32>, vector<8x16xf32>, vector<16x16xf32> -> vector<16x16xf32>
    %13 = arith.addf %9, %12 : vector<16x16xf32>
    %14 = math.tanh %13 : vector<16x16xf32>
    %cst_14 = arith.constant dense<0.000000e+00> : vector<16x8xf32>
    %15 = tpu.matmul %9, %10, %cst_14 {dimension_numbers = #tpu.dot_dimension_numbers<[1], [1], [0], [0], [0, 0, 1, 0], [], []>} : vector<16x16xf32>, vector<8x16xf32>, vector<16x8xf32> -> vector<16x8xf32>
    %16 = arith.addf %11, %15 : vector<16x8xf32>
    %17 = math.tanh %16 : vector<16x8xf32>
    %18 = tpu.concatenate %14, %17 in 1 : vector<16x16xf32>, vector<16x8xf32> -> vector<16x24xf32>
    %cst_15 = arith.constant dense<0.000000e+00> : vector<2x24xf32>
    %19 = tpu.matmul %2, %18, %cst_15 {dimension_numbers = #tpu.dot_dimension_numbers<[1], [0], [0], [1], [0, 0, 1, 1], [], []>} : vector<2x16xf32>, vector<16x24xf32>, vector<2x24xf32> -> vector<2x24xf32>
    %20 = vector.extract_strided_slice %19 {offsets = [0, 0], sizes = [1, 16], strides = [1, 1]} : vector<2x24xf32> to vector<1x16xf32>
    %21 = vector.extract_strided_slice %19 {offsets = [1, 16], sizes = [1, 8], strides = [1, 1]} : vector<2x24xf32> to vector<1x8xf32>
    %cst_16 = arith.constant dense<0xFF800000> : vector<1xf32>
    %22 = vector.multi_reduction <maximumf>, %20, %cst_16 [1] : vector<1x16xf32> to vector<1xf32>
    %23 = vector.shape_cast %22 : vector<1xf32> to vector<1x1xf32>
    %24 = vector.broadcast %23 : vector<1x1xf32> to vector<1x16xf32>
    %25 = arith.subf %20, %24 : vector<1x16xf32>
    %26 = math.exp %25 : vector<1x16xf32>
    %cst_17 = arith.constant dense<0.000000e+00> : vector<1xf32>
    %27 = vector.multi_reduction <add>, %26, %cst_17 [1] : vector<1x16xf32> to vector<1xf32>
    %28 = vector.shape_cast %27 : vector<1xf32> to vector<1x1xf32>
    %29 = vector.broadcast %28 : vector<1x1xf32> to vector<1x16xf32>
    %30 = arith.divf %26, %29 : vector<1x16xf32>
    %cst_18 = arith.constant dense<0xFF800000> : vector<1xf32>
    %31 = vector.multi_reduction <maximumf>, %21, %cst_18 [1] : vector<1x8xf32> to vector<1xf32>
    %32 = vector.shape_cast %31 : vector<1xf32> to vector<1x1xf32>
    %33 = vector.broadcast %32 : vector<1x1xf32> to vector<1x8xf32>
    %34 = arith.subf %21, %33 : vector<1x8xf32>
    %35 = math.exp %34 : vector<1x8xf32>
    %cst_19 = arith.constant dense<0.000000e+00> : vector<1xf32>
    %36 = vector.multi_reduction <add>, %35, %cst_19 [1] : vector<1x8xf32> to vector<1xf32>
    %37 = vector.shape_cast %36 : vector<1xf32> to vector<1x1xf32>
    %38 = vector.broadcast %37 : vector<1x1xf32> to vector<1x8xf32>
    %39 = arith.divf %35, %38 : vector<1x8xf32>
    %cst_20 = arith.constant 0.000000e+00 : f32
    %40 = vector.broadcast %cst_20 : f32 to vector<1x8xf32>
    %41 = arith.cmpf oeq, %39, %40 : vector<1x8xf32>
    %cst_21 = arith.constant -1.000000e+09 : f32
    %42 = vector.broadcast %cst_21 : f32 to vector<1x8xf32>
    %43 = arith.select %41, %39, %42 : vector<1x8xi1>, vector<1x8xf32>
    %cst_22 = arith.constant dense<0xFF800000> : vector<1xf32>
    %44 = vector.multi_reduction <maximumf>, %43, %cst_22 [1] : vector<1x8xf32> to vector<1xf32>
    %45 = vector.shape_cast %44 : vector<1xf32> to vector<1x1xf32>
    %46 = vector.broadcast %45 : vector<1x1xf32> to vector<1x8xf32>
    %47 = arith.subf %43, %46 : vector<1x8xf32>
    %48 = math.exp %47 : vector<1x8xf32>
    %cst_23 = arith.constant dense<0.000000e+00> : vector<1xf32>
    %49 = vector.multi_reduction <add>, %48, %cst_23 [1] : vector<1x8xf32> to vector<1xf32>
    %50 = vector.shape_cast %49 : vector<1xf32> to vector<1x1xf32>
    %51 = vector.broadcast %50 : vector<1x1xf32> to vector<1x8xf32>
    %52 = arith.divf %48, %51 : vector<1x8xf32>
    %cst_24 = arith.constant dense<0.000000e+00> : vector<1x32xf32>
    %53 = tpu.matmul %30, %4, %cst_24 {dimension_numbers = #tpu.dot_dimension_numbers<[1], [1], [0], [0], [0, 0, 1, 0], [], []>} : vector<1x16xf32>, vector<32x16xf32>, vector<1x32xf32> -> vector<1x32xf32>
    %cst_25 = arith.constant dense<0.000000e+00> : vector<1x32xf32>
    %54 = tpu.matmul %52, %6, %cst_25 {dimension_numbers = #tpu.dot_dimension_numbers<[1], [0], [0], [1], [0, 0, 1, 1], [], []>} : vector<1x8xf32>, vector<8x32xf32>, vector<1x32xf32> -> vector<1x32xf32>
    %55 = tpu.concatenate %30, %52, %53, %54 in 1 : vector<1x16xf32>, vector<1x8xf32>, vector<1x32xf32>, vector<1x32xf32> -> vector<1x88xf32>
    %cst_26 = arith.constant 0.000000e+00 : f32
    %56 = vector.broadcast %cst_26 : f32 to vector<1x40xf32>
    %57 = tpu.concatenate %55, %56 in 1 : vector<1x88xf32>, vector<1x40xf32> -> vector<1x128xf32>
    %c1 = arith.constant 1 : index
    %c0_27 = arith.constant 0 : index
    %c0_28 = arith.constant 0 : index
    %58 = vector.load %arg1[%c1, %c0_27, %c0_28] : memref<2x32x16xf32, #tpu.memory_space<vmem>>, vector<1x32x16xf32>
    %59 = vector.shape_cast %58 : vector<1x32x16xf32> to vector<32x16xf32>
    %c1_29 = arith.constant 1 : index
    %c0_30 = arith.constant 0 : index
    %c0_31 = arith.constant 0 : index
    %60 = vector.load %arg2[%c1_29, %c0_30, %c0_31] : memref<2x8x32xf32, #tpu.memory_space<vmem>>, vector<1x8x32xf32>
    %61 = vector.shape_cast %60 : vector<1x8x32xf32> to vector<8x32xf32>
    %cst_32 = arith.constant dense<0.000000e+00> : vector<48x16xf32>
    %62 = tpu.matmul %0, %59, %cst_32 {dimension_numbers = #tpu.dot_dimension_numbers<[1], [0], [0], [1], [0, 0, 1, 1], [], []>} : vector<48x32xf32>, vector<32x16xf32>, vector<48x16xf32> -> vector<48x16xf32>
    %63 = vector.extract_strided_slice %62 {offsets = [0, 0], sizes = [32, 16], strides = [1, 1]} : vector<48x16xf32> to vector<32x16xf32>
    %64 = vector.extract_strided_slice %62 {offsets = [32, 0], sizes = [16, 16], strides = [1, 1]} : vector<48x16xf32> to vector<16x16xf32>
    %cst_33 = arith.constant dense<0.000000e+00> : vector<8x16xf32>
    %65 = tpu.matmul %61, %63, %cst_33 {dimension_numbers = #tpu.dot_dimension_numbers<[1], [0], [0], [1], [0, 0, 1, 1], [], []>} : vector<8x32xf32>, vector<32x16xf32>, vector<8x16xf32> -> vector<8x16xf32>
    %cst_34 = arith.constant dense<0.000000e+00> : vector<16x8xf32>
    %66 = tpu.matmul %1, %61, %cst_34 {dimension_numbers = #tpu.dot_dimension_numbers<[1], [1], [0], [0], [0, 0, 1, 0], [], []>} : vector<16x32xf32>, vector<8x32xf32>, vector<16x8xf32> -> vector<16x8xf32>
    %cst_35 = arith.constant dense<0.000000e+00> : vector<16x16xf32>
    %67 = tpu.matmul %66, %65, %cst_35 {dimension_numbers = #tpu.dot_dimension_numbers<[1], [0], [0], [1], [0, 0, 1, 1], [], []>} : vector<16x8xf32>, vector<8x16xf32>, vector<16x16xf32> -> vector<16x16xf32>
    %68 = arith.addf %64, %67 : vector<16x16xf32>
    %69 = math.tanh %68 : vector<16x16xf32>
    %cst_36 = arith.constant dense<0.000000e+00> : vector<16x8xf32>
    %70 = tpu.matmul %64, %65, %cst_36 {dimension_numbers = #tpu.dot_dimension_numbers<[1], [1], [0], [0], [0, 0, 1, 0], [], []>} : vector<16x16xf32>, vector<8x16xf32>, vector<16x8xf32> -> vector<16x8xf32>
    %71 = arith.addf %66, %70 : vector<16x8xf32>
    %72 = math.tanh %71 : vector<16x8xf32>
    %73 = tpu.concatenate %69, %72 in 1 : vector<16x16xf32>, vector<16x8xf32> -> vector<16x24xf32>
    %cst_37 = arith.constant dense<0.000000e+00> : vector<2x24xf32>
    %74 = tpu.matmul %2, %73, %cst_37 {dimension_numbers = #tpu.dot_dimension_numbers<[1], [0], [0], [1], [0, 0, 1, 1], [], []>} : vector<2x16xf32>, vector<16x24xf32>, vector<2x24xf32> -> vector<2x24xf32>
    %75 = vector.extract_strided_slice %74 {offsets = [0, 0], sizes = [1, 16], strides = [1, 1]} : vector<2x24xf32> to vector<1x16xf32>
    %76 = vector.extract_strided_slice %74 {offsets = [1, 16], sizes = [1, 8], strides = [1, 1]} : vector<2x24xf32> to vector<1x8xf32>
    %cst_38 = arith.constant dense<0xFF800000> : vector<1xf32>
    %77 = vector.multi_reduction <maximumf>, %75, %cst_38 [1] : vector<1x16xf32> to vector<1xf32>
    %78 = vector.shape_cast %77 : vector<1xf32> to vector<1x1xf32>
    %79 = vector.broadcast %78 : vector<1x1xf32> to vector<1x16xf32>
    %80 = arith.subf %75, %79 : vector<1x16xf32>
    %81 = math.exp %80 : vector<1x16xf32>
    %cst_39 = arith.constant dense<0.000000e+00> : vector<1xf32>
    %82 = vector.multi_reduction <add>, %81, %cst_39 [1] : vector<1x16xf32> to vector<1xf32>
    %83 = vector.shape_cast %82 : vector<1xf32> to vector<1x1xf32>
    %84 = vector.broadcast %83 : vector<1x1xf32> to vector<1x16xf32>
    %85 = arith.divf %81, %84 : vector<1x16xf32>
    %cst_40 = arith.constant dense<0xFF800000> : vector<1xf32>
    %86 = vector.multi_reduction <maximumf>, %76, %cst_40 [1] : vector<1x8xf32> to vector<1xf32>
    %87 = vector.shape_cast %86 : vector<1xf32> to vector<1x1xf32>
    %88 = vector.broadcast %87 : vector<1x1xf32> to vector<1x8xf32>
    %89 = arith.subf %76, %88 : vector<1x8xf32>
    %90 = math.exp %89 : vector<1x8xf32>
    %cst_41 = arith.constant dense<0.000000e+00> : vector<1xf32>
    %91 = vector.multi_reduction <add>, %90, %cst_41 [1] : vector<1x8xf32> to vector<1xf32>
    %92 = vector.shape_cast %91 : vector<1xf32> to vector<1x1xf32>
    %93 = vector.broadcast %92 : vector<1x1xf32> to vector<1x8xf32>
    %94 = arith.divf %90, %93 : vector<1x8xf32>
    %cst_42 = arith.constant 0.000000e+00 : f32
    %95 = vector.broadcast %cst_42 : f32 to vector<1x8xf32>
    %96 = arith.cmpf oeq, %94, %95 : vector<1x8xf32>
    %cst_43 = arith.constant -1.000000e+09 : f32
    %97 = vector.broadcast %cst_43 : f32 to vector<1x8xf32>
    %98 = arith.select %96, %94, %97 : vector<1x8xi1>, vector<1x8xf32>
    %cst_44 = arith.constant dense<0xFF800000> : vector<1xf32>
    %99 = vector.multi_reduction <maximumf>, %98, %cst_44 [1] : vector<1x8xf32> to vector<1xf32>
    %100 = vector.shape_cast %99 : vector<1xf32> to vector<1x1xf32>
    %101 = vector.broadcast %100 : vector<1x1xf32> to vector<1x8xf32>
    %102 = arith.subf %98, %101 : vector<1x8xf32>
    %103 = math.exp %102 : vector<1x8xf32>
    %cst_45 = arith.constant dense<0.000000e+00> : vector<1xf32>
    %104 = vector.multi_reduction <add>, %103, %cst_45 [1] : vector<1x8xf32> to vector<1xf32>
    %105 = vector.shape_cast %104 : vector<1xf32> to vector<1x1xf32>
    %106 = vector.broadcast %105 : vector<1x1xf32> to vector<1x8xf32>
    %107 = arith.divf %103, %106 : vector<1x8xf32>
    %cst_46 = arith.constant dense<0.000000e+00> : vector<1x32xf32>
    %108 = tpu.matmul %85, %59, %cst_46 {dimension_numbers = #tpu.dot_dimension_numbers<[1], [1], [0], [0], [0, 0, 1, 0], [], []>} : vector<1x16xf32>, vector<32x16xf32>, vector<1x32xf32> -> vector<1x32xf32>
    %cst_47 = arith.constant dense<0.000000e+00> : vector<1x32xf32>
    %109 = tpu.matmul %107, %61, %cst_47 {dimension_numbers = #tpu.dot_dimension_numbers<[1], [0], [0], [1], [0, 0, 1, 1], [], []>} : vector<1x8xf32>, vector<8x32xf32>, vector<1x32xf32> -> vector<1x32xf32>
    %110 = tpu.concatenate %85, %107, %108, %109 in 1 : vector<1x16xf32>, vector<1x8xf32>, vector<1x32xf32>, vector<1x32xf32> -> vector<1x88xf32>
    %cst_48 = arith.constant 0.000000e+00 : f32
    %111 = vector.broadcast %cst_48 : f32 to vector<1x40xf32>
    %112 = tpu.concatenate %110, %111 in 1 : vector<1x88xf32>, vector<1x40xf32> -> vector<1x128xf32>
    %113 = tpu.concatenate %57, %112 in 0 : vector<1x128xf32>, vector<1x128xf32> -> vector<2x128xf32>
    %c0_49 = arith.constant 0 : index
    %c0_50 = arith.constant 0 : index
    %114 = vector.load %arg6[%c0_49, %c0_50] : memref<2x128xf32, #tpu.memory_space<vmem>>, vector<2x128xf32>
    tpu.vector_store %arg6[%c0_49, %c0_50], %113 {strides = array<i32>} : memref<2x128xf32, #tpu.memory_space<vmem>>, vector<2x128xf32>,
    return
  }
  func.func @transform_0(%arg0: i32) -> (i32, i32, i32) {
    %c0_i32 = arith.constant 0 : i32
    %c0_i32_0 = arith.constant 0 : i32
    %c0_i32_1 = arith.constant 0 : i32
    %c0_i32_2 = arith.constant 0 : i32
    return %c0_i32, %c0_i32_0, %c0_i32_1 : i32, i32, i32
  }
  func.func @transform_1(%arg0: i32) -> (i32, i32, i32) {
    %c0_i32 = arith.constant 0 : i32
    %c0_i32_0 = arith.constant 0 : i32
    %c0_i32_1 = arith.constant 0 : i32
    %c0_i32_2 = arith.constant 0 : i32
    return %c0_i32, %c0_i32_0, %c0_i32_1 : i32, i32, i32
  }
  func.func @transform_2(%arg0: i32) -> (i32, i32) {
    %c0_i32 = arith.constant 0 : i32
    %c0_i32_0 = arith.constant 0 : i32
    %c0_i32_1 = arith.constant 0 : i32
    return %c0_i32, %c0_i32_0 : i32, i32
  }
  func.func @transform_3(%arg0: i32) -> (i32, i32) {
    %c0_i32 = arith.constant 0 : i32
    %c0_i32_0 = arith.constant 0 : i32
    %c0_i32_1 = arith.constant 0 : i32
    return %c0_i32, %c0_i32_0 : i32, i32
  }
  func.func @transform_4(%arg0: i32) -> (i32, i32) {
    %c0_i32 = arith.constant 0 : i32
    %c0_i32_0 = arith.constant 0 : i32
    %c0_i32_1 = arith.constant 0 : i32
    return %c0_i32, %c0_i32_0 : i32, i32
  }
  func.func @transform_5(%arg0: i32) -> (i32, i32) {
    %c0_i32 = arith.constant 0 : i32
    %c0_i32_0 = arith.constant 0 : i32
    %c0_i32_1 = arith.constant 0 : i32
    return %c0_i32, %c0_i32_0 : i32, i32
  }
}

</mosaic_0001>

<bundles_post_ra>
// kernel: tpu_custom_call.1
= control target key start
LH: loop header
LB: loop body
LE: loop exit
PB: predicated region body
PF: predicated region fallthrough
CT: control target
= control target key end

     0   :  { %vm35_vm0 = vcmask 261120   ;;  %s2200_s0 = inlined_call_operand.vmem [shape: f32[2,32,16], index: 0, kind: input, shape index: {}]   ;;  %s2201_s1 = inlined_call_operand.vmem [shape: f32[2,8,32], index: 1, kind: input, shape index: {}]   ;;  %s2202_s2 = inlined_call_operand.vmem [shape: f32[48,32], index: 2, kind: input, shape index: {}]   ;;  %s2203_s3 = inlined_call_operand.vmem [shape: f32[16,32], index: 3, kind: input, shape index: {}]   ;;  %s2204_s4 = inlined_call_operand.vmem [shape: f32[2,16], index: 4, kind: input, shape index: {}]   ;;  %s2205_s5 = inlined_call_operand.hbm [shape: f32[2,128], index: 5, kind: output, shape index: {}]  }
   0x1   :  { %v30_v0 = vld [vmem:[%s2200_s0] sm:$0xff]  ;;  %v31_v1 = vld [vmem:[%s2200_s0 + $0x8] sm:$0xff]  ;;  %v32_v2 = vld [vmem:[%s2200_s0 + $0x10] sm:$0xff] }
   0x2   :  { %v1952_v3 = vpack.c.bf16 %v31_v1, %v30_v0  ;;  %v33_v4 = vld [vmem:[%s2200_s0 + $0x18] sm:$0xff]  ;;  %v1960_v5 = vld [vmem:[%s2202_s2] sm:$0xff] }
   0x3   :  { %v1962_v6 = vpack.c.bf16 %v33_v4, %v32_v2  ;;  %1649 = vmatprep.mubr.msk.f32.mxu0 %vm35_vm0, %v1960_v5 }
   0x4   :  { %10 = vsyncpa [#allocation3], 0  ;;  %1774 = vmatprep.subr.bf16.mxu0 %v1952_v3  ;;  %v1973_v7 = vld [vmem:[%s2202_s2 + $0x8] sm:$0xff]  ;;  %v1978_v8 = vld [vmem:[%s2202_s2 + $0x10] sm:$0xff]  ;;  %v1905_v10 = vmov 0.0|0.0   ;;  %vm1906_vm1 = vmmov 0  }
   0x5   :  { %1776 = vmatpush3.bf16.msra.mxu0 %v1952_v3  ;;  %v1987_v9 = vld [vmem:[%s2202_s2 + $0x18] sm:$0xff]  ;;  %v1995_v11 = vld [vmem:[%s2202_s2 + $0x20] sm:$0xff]  ;;  %v2002_v12 = vld [vmem:[%s2202_s2 + $0x28] sm:$0xff]  ;;  %v1907_v15 = vmov 0.0   ;;  %vm389_vm2 = vcmask 130048   ;;  %vm303_vm3 = vcmask 64512  }
   0x6   :  { %1778 = vmatprep.subr.bf16.mxu0 %v1962_v6  ;;  %v2009_v13 = vld [vmem:[%s2201_s1] sm:$0xff]  ;;  %v2027_v16 = vld [vmem:[%s2203_s3 + $0x8] sm:$0xff]  ;;  %vm573_vm4 = vcmask 189569   ;;  %vm584_vm5 = vcmask 58369   ;;  %vm561_vm7 = vcmask 122880   ;;  %vm2081_vm8 = vmpackc.low %vm389_vm2, %vm389_vm2  ;;  %s1911_s29 = smov 56  }
   0x7   :  { %1669 = vmatprep.subr.msk.mxu1 %vm35_vm0, %v2009_v13  ;;  %v2018_v14 = vld [vmem:[%s2203_s3] sm:$0xff]  ;;  %s1908_s3 = smov 16   ;;  %vm778_vm10 = vcmask 195584   ;;  %vm780_vm11 = vcmask 457728   ;;  %vm782_vm12 = vcmask 719872   ;;  %s1912_s30 = smov [#allocation2]  }
   0x8   :  { %1670 = vmatpush3.xpose.msk.msra.mxu1 %vm35_vm0, %v2009_v13  ;;  %1671 = vmatprep.mubr.msk.f32.mxu1 %vm35_vm0, %v2018_v14  ;;  %v2052_v48 = vld [vmem:[%s2204_s4] sm:$0x3]  ;;  %s1909_s4 = smov 112   ;;  %s1516_s6 = sshll.u32 %s1912_s30, 4  ;;  %vm1507_vm13 = vcmask 1040384   ;;  %s1517_s6 = int_to_ptr.vmem [resolvable:$true] %s1516_s6 }
   0x9   :  { %1780 = vmatpush3.bf16.msra.mxu0 %v1962_v6  ;;  %s1881_s7 = scalar_lea.vmem %s1517_s6, 32  ;;  %p1886_p1 = scmp.lt.s32.totalorder %s1517_s6, %s1517_s6 }
   0xa   :  { %1781 = vmatprep.subr.bf16.mxu0 %v1905_v10  ;;  %p1882_p0 = scmp.ne.s32.totalorder %s1517_s6, %s1881_s7  ;;  %p1887_p2 = scmp.lt.s32.totalorder %s1881_s7, %s1881_s7 }
   0xb   :  { %1672 = vmatmul.mubr.msk.f32.vlgmr.msra.gmra.mrb[0].mxu1 %vm35_vm0, %v2027_v16 }
   0xc   :  { %1650 = vmatmul.mubr.msk.f32.vlgmr.msra.gmra.mrb[0].mxu0 %vm35_vm0, %v1973_v7  ;;  %p1888_p3 = por %p1887_p2, %p1886_p1 }
   0xd   :  { %1652 = vmatprep.mubr.msk.f32.mxu0 %vm35_vm0, %v1978_v8 }
   0xe   :  { %p1889_p4 = pnand %p1888_p3, %p1882_p0 }
  0x10   :  { %1653 = vmatmul.mubr.msk.f32.gmra.mrb[2].mxu0 %vm35_vm0, %v1987_v9 }
  0x11   :  { %1655 = vmatprep.mubr.msk.f32.mxu0 %vm35_vm0, %v1995_v11 }
  0x14   :  { %1656 = vmatmul.mubr.msk.f32.gmra.mrb[4].mxu0 %vm35_vm0, %v2002_v12 }
  0x15   :  { %1666 = vmatprep.mubr.msk.f32.mxu0 %vm1906_vm1, %v1907_v15 }
  0xde   :  { %v1673_v25 = vpop.f32.mrb[0].mxu1 }
  0xdf   :  { %v1651_v17 = vpop.f32.mrb[0].mxu0  ;;  %v294_v26 = vpop.f32.mrb[1].mxu1 }
  0xe0   :  { %v120_v18 = vpop.f32.mrb[1].mxu0  ;;  %1676 = vmatprep.mubr.msk.f32.mxu1 %vm303_vm3, %v294_v26 }
  0xe1   :  { %v1782_v19 = vpack.c.bf16 %v1651_v17, %v120_v18  ;;  %v1546_v18 = vld [vmem:[%s2200_s0 + $0x20] sm:$0xff] }
  0xe3   :  { %v1654_v20 = vpop.f32.mrb[2].mxu0  ;;  %1783 = vmatpush3.bf16.msra.mxu0 %v1782_v19  ;;  %v1547_v19 = vld [vmem:[%s2200_s0 + $0x28] sm:$0xff] }
  0xe4   :  { %v130_v21 = vpop.f32.mrb[3].mxu0  ;;  %1784 = vmatprep.subr.bf16.mxu0 %v1905_v10 }
  0xe5   :  { %v1785_v22 = vpack.c.bf16 %v1654_v20, %v130_v21  ;;  %v2073_v20 = vpack.c.bf16 %v1547_v19, %v1546_v18 }
  0xe7   :  { %1786 = vmatpush3.bf16.msra.mxu0 %v1785_v22  ;;  %v1657_v23 = vpop.f32.mrb[4].mxu0 }
  0xe8   :  { %v140_v24 = vpop.f32.mrb[5].mxu0 }
  0xea   :  { %1667 = vmatmul.mubr.msk.f32.vlgmr.msra.gmra.mrb[6].mxu0 %vm35_vm0, %v2009_v13 }
  0xeb   :  { %1681 = vmatprep.mubr.msk.f32.mxu0 %vm389_vm2, %v140_v24 }
 0x1bd   :  { %v218_v27 = vpop.f32.mrb[6].mxu0 }
 0x1be   :  { %1674 = vmatprep.subr.mxu1 %v218_v27  ;;  %1679 = vmatprep.subr.msk.mxu0 %vm389_vm2, %v218_v27  ;;  %v1668_v28 = vpop.f32.mrb[7].mxu0 }
 0x1bf   :  { %1675 = vmatpush3.msra.mxu1 %v218_v27  ;;  %1680 = vmatpush3.xpose.msk.msra.mxu0 %vm389_vm2, %v218_v27 }
 0x1c0   :  { %1677 = vmatmul.mubr.msk.f32.vlgmr.msra.gmra.mrb[2].mxu1 %vm303_vm3, %v1673_v25  ;;  %1787 = vmatprep.subr.bf16.mxu1 %v1905_v10 }
 0x1c1   :  { %1688 = vmatprep.mubr.msk.f32.mxu1 %vm1906_vm1, %v1907_v15  ;;  %1790 = vmatprep.subr.bf16.mxu0 %v1905_v10 }
 0x1c2   :  { %1682 = vmatmul.mubr.msk.f32.vlgmr.msra.gmra.mrb[8].mxu0 %vm389_vm2, %v1657_v23 }
 0x1c3   :  { %1699 = vmatprep.mubr.msk.f32.mxu0 %vm1906_vm1, %v1907_v15  ;;  %1793 = vmatpush3.bf16.xpose.msk.msra.mxu0 %vm2081_vm8, %v1952_v3  ;;  %v1548_v3 = vld [vmem:[%s2200_s0 + $0x30] sm:$0xff] }
 0x1c4   :  { %1794 = vmatprep.subr.bf16.mxu0 %v1905_v10 }
 0x1cb   :  { %1797 = vmatpush3.bf16.xpose.msk.msra.mxu0 %vm2081_vm8, %v1962_v6 }
 0x1cc   :  { %1806 = vmatprep.subr.bf16.mxu0 %v1905_v10 }
 0x293   :  { %v1678_v29 = vpop.f32.mrb[2].mxu1 }
 0x294   :  { %v386_v30 = vadd.f32 %v1678_v29, %v1657_v23  ;;  %v376_v31 = vpop.f32.mrb[3].mxu1 }
 0x295   :  { %v385_v32 = vadd.f32 %v376_v31, %v140_v24  ;;  %v1683_v33 = vpop.f32.mrb[8].mxu0  ;;  %v1549_v31 = vld [vmem:[%s2200_s0 + $0x38] sm:$0xff] }
 0x296   :  { %v475_v34 = vadd.f32 %v1683_v33, %v1673_v25  ;;  %v465_v35 = vpop.f32.mrb[9].mxu0 }
 0x297   :  { %v474_v36 = vadd.f32 %v465_v35, %v294_v26 }
 0x298   :  { %1841 = vtanh.f32 %v475_v34 }
 0x299   :  { %1843 = vtanh.f32 %v474_v36 }
 0x29a   :  { %1845 = vtanh.f32 %v386_v30 }
 0x29b   :  { %1847 = vtanh.f32 %v385_v32  ;;  %v1802_v32 = vpack.c.bf16 %v1549_v31, %v1548_v3 }
 0x2a2   :  { %v1842_v37 = vpop.eup %1841 }
 0x2a3   :  { %v1844_v38 = vpop.eup %1843 }
 0x2a4   :  { %v1831_v39 = vpack.i.bf16 %v1842_v37, %v1844_v38  ;;  %v1846_v41 = vpop.eup %1845 }
 0x2a5   :  { %v1848_v44 = vpop.eup %1847 }
 0x2a6   :  { %1832 = vrot.lane.b32.xlu0 %v1831_v39, %s1908_s3 }
 0x318   :  { %v1833_v40 = vpop.permute.xlu0 %1832 }
 0x319   :  { %v1835_v42 = vunpack.i.h.bf16 %v1833_v40  ;;  %v1834_v43 = vunpack.i.l.bf16 %v1833_v40 }
 0x31b   :  { %v487_v45 = vsel %vm389_vm2, %v1846_v41, %v1835_v42  ;;  %v486_v46 = vsel %vm389_vm2, %v1848_v44, %v1834_v43 }
 0x31c   :  { %v1788_v47 = vpack.c.bf16 %v487_v45, %v486_v46 }
 0x31e   :  { %1789 = vmatpush3.bf16.msra.mxu1 %v1788_v47 }
 0x31f   :  { %1702 = vmatprep.subr.mxu1 %v1907_v15 }
 0x321   :  { %1689 = vmatmul.mubr.msk.f32.vlgmr.msra.gmra.mrb[4].mxu1 %vm389_vm2, %v2052_v48 }
 0x322   :  { %1703 = vmatpush3.msra.mxu1 %v2009_v13  ;;  %1704 = vmatprep.mubr.msk.f32.mxu1 %vm1906_vm1, %v1907_v15 }
 0x323   :  { %1799 = vmatprep.subr.bf16.mxu1 %v2073_v20 }
 0x3f4   :  { %v557_v49 = vpop.f32.mrb[4].mxu1 }
 0x3f5   :  { %v574_v50 = vsel %vm573_vm4, %v557_v49, -inf  ;;  %v1690_v51 = vpop.f32.mrb[5].mxu1  ;;  %v562_v4 = vsel %vm561_vm7, %v557_v49, -inf }
 0x3f6   :  { %575 = vmax.xlane.f32.xlu0 %v574_v50 }
 0x483   :  { %v576_v52 = vpop.xlane.xlu0 %575 }
 0x484   :  { %v577_v53 = vsub.f32 %v557_v49, %v576_v52 }
 0x486   :  { %v578_v54 = vmul.f32 1.442695, %v577_v53 }
 0x488   :  { %1849 = vpow2.f32 %v578_v54 }
 0x492   :  { %v1850_v55 = vpop.eup %1849 }
 0x493   :  { %581 = vrot.lane.b32.xlu1 %v1850_v55, %s1909_s4 }
 0x505   :  { %v582_v56 = vpop.permute.xlu1 %581 }
 0x506   :  { %v585_v57 = vsel %vm584_vm5, %v582_v56, 0.0 }
 0x507   :  { %586 = vadd.xlane.f32.xlu1 %v585_v57 }
 0x594   :  { %v587_v58 = vpop.xlane.xlu1 %586 }
 0x595   :  { %1851 = vrcp.f32 %v587_v58 }
 0x59f   :  { %v1852_v59 = vpop.eup %1851 }
 0x5a0   :  { %v589_v60 = vmul.f32 %v1852_v59, %v1850_v55 }
 0x5a2   :  { %vm590_vm6 = vcmp.eq.f32.partialorder %v589_v60, 0.0 }
 0x5a3   :  { %v591_v61 = vsel %vm590_vm6, %v589_v60, -1e+09 }
 0x5a4   :  { %v592_v62 = vsel %vm573_vm4, %v591_v61, -inf }
 0x5a5   :  { %593 = vmax.xlane.f32.xlu0 %v592_v62 }
 0x632   :  { %v594_v63 = vpop.xlane.xlu0 %593 }
 0x633   :  { %v595_v0 = vsub.f32 %v591_v61, %v594_v63 }
 0x635   :  { %v596_v1 = vmul.f32 1.442695, %v595_v0 }
 0x637   :  { %1853 = vpow2.f32 %v596_v1 }
 0x641   :  { %v1854_v2 = vpop.eup %1853 }
 0x642   :  { %599 = vrot.lane.b32.xlu0 %v1854_v2, %s1909_s4 }
 0x661   :  { %563 = vmax.xlane.f32.xlu0 %v562_v4 }
 0x6b4   :  { %v600_v13 = vpop.permute.xlu0 %599 }
 0x6b5   :  { %v602_v17 = vsel %vm584_vm5, %v600_v13, 0.0 }
 0x6b6   :  { %603 = vadd.xlane.f32.xlu1 %v602_v17 }
 0x6ee   :  { %v564_v26 = vpop.xlane.xlu0 %563 }
 0x6ef   :  { %v565_v27 = vsub.f32 %v557_v49, %v564_v26 }
 0x6f1   :  { %v566_v28 = vmul.f32 1.442695, %v565_v27 }
 0x743   :  { %v604_v21 = vpop.xlane.xlu1 %603 }
 0x744   :  { %1855 = vrcp.f32 %v604_v21 }
 0x745   :  { %1857 = vpow2.f32 %v566_v28 }
 0x74e   :  { %v1856_v22 = vpop.eup %1855 }
 0x74f   :  { %v2076_v23 = vmul.f32 %v1856_v22, %v1854_v2  ;;  %v1858_v29 = vpop.eup %1857 }
 0x750   :  { %v568_v30 = vsel %vm561_vm7, %v1858_v29, 0.0 }
 0x751   :  { %v693_v24 = vrot.slane %v2076_v23, 1 }
 0x753   :  { %694 = vrot.lane.b32.xlu1 %v693_v24, %s1909_s4 }
 0x777   :  { %569 = vadd.xlane.f32.xlu1 %v568_v30 }
 0x7c5   :  { %v695_v6 = vpop.permute.xlu1 %694 }
 0x7c6   :  { %1705 = vmatmul.mubr.msk.f32.vlgmr.msra.gmra.mrb[6].mxu1 %vm303_vm3, %v695_v6 }
 0x7c7   :  { %1801 = vmatpush3.bf16.msra.mxu1 %v2073_v20  ;;  %1715 = vmatprep.mubr.msk.f32.mxu1 %vm35_vm0, %v1960_v5 }
 0x7c8   :  { %1803 = vmatprep.subr.bf16.mxu1 %v1802_v32 }
 0x7cb   :  { %1805 = vmatpush3.bf16.msra.mxu1 %v1802_v32 }
 0x7ce   :  { %1716 = vmatmul.mubr.msk.f32.vlgmr.msra.gmra.mrb[8].mxu1 %vm35_vm0, %v1973_v7  ;;  %v2128_v7 = vld [vmem:[%s2201_s1 + $0x8] sm:$0xff]  ;;  %s1910_s1 = smov 24  }
 0x7cf   :  { %1718 = vmatprep.mubr.msk.f32.mxu1 %vm35_vm0, %v1978_v8  ;;  %1735 = vmatprep.subr.msk.mxu1 %vm35_vm0, %v2128_v7 }
 0x7d2   :  { %1719 = vmatmul.mubr.msk.f32.gmra.mrb[10].mxu1 %vm35_vm0, %v1987_v9 }
 0x7d3   :  { %1721 = vmatprep.mubr.msk.f32.mxu1 %vm35_vm0, %v1995_v11 }
 0x7d4   :  { %1736 = vmatpush3.xpose.msk.msra.mxu1 %vm35_vm0, %v2128_v7 }
 0x7d6   :  { %1722 = vmatmul.mubr.msk.f32.gmra.mrb[12].mxu1 %vm35_vm0, %v2002_v12 }
 0x7d7   :  { %1737 = vmatprep.mubr.msk.f32.mxu1 %vm35_vm0, %v2018_v14 }
 0x7da   :  { %1738 = vmatmul.mubr.msk.f32.vlgmr.msra.gmra.mrb[14].mxu1 %vm35_vm0, %v2027_v16 }
 0x804   :  { %v570_v5 = vpop.xlane.xlu1 %569 }
 0x805   :  { %1859 = vrcp.f32 %v570_v5 }
 0x80f   :  { %v1860_v33 = vpop.eup %1859 }
 0x810   :  { %v2119_v34 = vmul.f32 %v1860_v33, %v1858_v29 }
 0x812   :  { %1700 = vmatmul.mubr.msk.f32.vlgmr.msra.gmra.mrb[10].mxu0 %vm389_vm2, %v2119_v34 }
 0x813   :  { %1732 = vmatprep.mubr.msk.f32.mxu0 %vm1906_vm1, %v1907_v15 }
 0x899   :  { %v2136_v8 = vpop.f32.mrb[6].mxu1 }
 0x89a   :  { %v1706_v9 = vpop.f32.mrb[7].mxu1 }
 0x8a1   :  { %v1717_v11 = vpop.f32.mrb[8].mxu1 }
 0x8a2   :  { %v857_v12 = vpop.f32.mrb[9].mxu1 }
 0x8a3   :  { %v1807_v14 = vpack.c.bf16 %v1717_v11, %v857_v12 }
 0x8a5   :  { %v1720_v35 = vpop.f32.mrb[10].mxu1  ;;  %1808 = vmatpush3.bf16.msra.mxu0 %v1807_v14 }
 0x8a6   :  { %v867_v36 = vpop.f32.mrb[11].mxu1  ;;  %1809 = vmatprep.subr.bf16.mxu0 %v1905_v10 }
 0x8a7   :  { %v1810_v37 = vpack.c.bf16 %v1720_v35, %v867_v36 }
 0x8a9   :  { %1811 = vmatpush3.bf16.msra.mxu0 %v1810_v37  ;;  %v1723_v38 = vpop.f32.mrb[12].mxu1 }
 0x8aa   :  { %v877_v39 = vpop.f32.mrb[13].mxu1 }
 0x8ab   :  { %1747 = vmatprep.mubr.msk.f32.mxu1 %vm389_vm2, %v877_v39 }
 0x8ac   :  { %1733 = vmatmul.mubr.msk.f32.vlgmr.msra.gmra.mrb[12].mxu0 %vm35_vm0, %v2128_v7 }
 0x8ad   :  { %v1739_v41 = vpop.f32.mrb[14].mxu1 }
 0x8ae   :  { %v1025_v42 = vpop.f32.mrb[15].mxu1 }
 0x8af   :  { %1742 = vmatprep.mubr.msk.f32.mxu0 %vm303_vm3, %v1025_v42 }
 0x8e5   :  { %v2142_v16 = vpop.f32.mrb[10].mxu0 }
 0x8e6   :  { %v1701_v40 = vpop.f32.mrb[11].mxu0 }
 0x97f   :  { %v955_v43 = vpop.f32.mrb[12].mxu0 }
 0x980   :  { %1740 = vmatprep.subr.mxu0 %v955_v43  ;;  %1745 = vmatprep.subr.msk.mxu1 %vm389_vm2, %v955_v43  ;;  %v1734_v44 = vpop.f32.mrb[13].mxu0 }
 0x981   :  { %1741 = vmatpush3.msra.mxu0 %v955_v43  ;;  %1746 = vmatpush3.xpose.msk.msra.mxu1 %vm389_vm2, %v955_v43 }
 0x982   :  { %1743 = vmatmul.mubr.msk.f32.vlgmr.msra.gmra.mrb[14].mxu0 %vm303_vm3, %v1739_v41  ;;  %1812 = vmatprep.subr.bf16.mxu0 %v1905_v10 }
 0x983   :  { %1754 = vmatprep.mubr.msk.f32.mxu0 %vm1906_vm1, %v1907_v15  ;;  %1815 = vmatprep.subr.bf16.mxu1 %v1905_v10 }
 0x984   :  { %1748 = vmatmul.mubr.msk.f32.vlgmr.msra.gmra.mrb[16].mxu1 %vm389_vm2, %v1723_v38 }
 0x985   :  { %1818 = vmatpush3.bf16.xpose.msk.msra.mxu1 %vm2081_vm8, %v2073_v20  ;;  %1765 = vmatprep.mubr.msk.f32.mxu1 %vm1906_vm1, %v1907_v15 }
 0x986   :  { %1819 = vmatprep.subr.bf16.mxu1 %v1905_v10 }
 0x98d   :  { %1822 = vmatpush3.bf16.xpose.msk.msra.mxu1 %vm2081_vm8, %v1802_v32 }
 0xa55   :  { %v1744_v45 = vpop.f32.mrb[14].mxu0 }
 0xa56   :  { %v1116_v46 = vadd.f32 %v1744_v45, %v1723_v38  ;;  %v1106_v47 = vpop.f32.mrb[15].mxu0 }
 0xa57   :  { %v1115_v49 = vadd.f32 %v1106_v47, %v877_v39  ;;  %v1749_v50 = vpop.f32.mrb[16].mxu1 }
 0xa58   :  { %v1204_v51 = vadd.f32 %v1749_v50, %v1739_v41  ;;  %v1194_v52 = vpop.f32.mrb[17].mxu1 }
 0xa59   :  { %v1203_v53 = vadd.f32 %v1194_v52, %v1025_v42 }
 0xa5a   :  { %1861 = vtanh.f32 %v1204_v51 }
 0xa5b   :  { %1863 = vtanh.f32 %v1203_v53 }
 0xa5c   :  { %1865 = vtanh.f32 %v1116_v46 }
 0xa5d   :  { %1867 = vtanh.f32 %v1115_v49 }
 0xa64   :  { %v1862_v54 = vpop.eup %1861 }
 0xa65   :  { %v1864_v55 = vpop.eup %1863 }
 0xa66   :  { %v1836_v56 = vpack.i.bf16 %v1862_v54, %v1864_v55  ;;  %v1866_v57 = vpop.eup %1865 }
 0xa67   :  { %v1868_v60 = vpop.eup %1867 }
 0xa68   :  { %1837 = vrot.lane.b32.xlu0 %v1836_v56, %s1908_s3 }
 0xada   :  { %v1838_v10 = vpop.permute.xlu0 %1837 }
 0xadb   :  { %v1840_v58 = vunpack.i.h.bf16 %v1838_v10  ;;  %v1839_v59 = vunpack.i.l.bf16 %v1838_v10 }
 0xadd   :  { %v1215_v61 = vsel %vm389_vm2, %v1868_v60, %v1839_v59  ;;  %v1216_v62 = vsel %vm389_vm2, %v1866_v57, %v1840_v58 }
 0xade   :  { %v1813_v63 = vpack.c.bf16 %v1216_v62, %v1215_v61 }
 0xae0   :  { %1814 = vmatpush3.bf16.msra.mxu0 %v1813_v63 }
 0xae1   :  { %1768 = vmatprep.subr.mxu0 %v1907_v15 }
 0xae3   :  { %1755 = vmatmul.mubr.msk.f32.vlgmr.msra.gmra.mrb[16].mxu0 %vm389_vm2, %v2052_v48 }
 0xae4   :  { %1769 = vmatpush3.msra.mxu0 %v2128_v7  ;;  %1770 = vmatprep.mubr.msk.f32.mxu0 %vm1906_vm1, %v1907_v15 }
 0xbb6   :  { %v1283_v0 = vpop.f32.mrb[16].mxu0 }
 0xbb7   :  { %v1298_v1 = vsel %vm573_vm4, %v1283_v0, -inf  ;;  %v1756_v2 = vpop.f32.mrb[17].mxu0  ;;  %v1287_v26 = vsel %vm561_vm7, %v1283_v0, -inf }
 0xbb8   :  { %1299 = vmax.xlane.f32.xlu1 %v1298_v1 }
 0xc45   :  { %v1300_v4 = vpop.xlane.xlu1 %1299 }
 0xc46   :  { %v1301_v13 = vsub.f32 %v1283_v0, %v1300_v4 }
 0xc48   :  { %v1302_v17 = vmul.f32 1.442695, %v1301_v13 }
 0xc4a   :  { %1869 = vpow2.f32 %v1302_v17 }
 0xc54   :  { %v1870_v18 = vpop.eup %1869 }
 0xc55   :  { %1305 = vrot.lane.b32.xlu1 %v1870_v18, %s1909_s4 }
 0xcc7   :  { %v1306_v19 = vpop.permute.xlu1 %1305 }
 0xcc8   :  { %v1308_v48 = vsel %vm584_vm5, %v1306_v19, 0.0 }
 0xcc9   :  { %1309 = vadd.xlane.f32.xlu0 %v1308_v48 }
 0xd56   :  { %v1310_v20 = vpop.xlane.xlu0 %1309 }
 0xd57   :  { %1871 = vrcp.f32 %v1310_v20 }
 0xd61   :  { %v1872_v21 = vpop.eup %1871 }
 0xd62   :  { %v1312_v15 = vmul.f32 %v1872_v21, %v1870_v18 }
 0xd64   :  { %vm1313_vm9 = vcmp.eq.f32.partialorder %v1312_v15, 0.0 }
 0xd65   :  { %v1314_v22 = vsel %vm1313_vm9, %v1312_v15, -1e+09 }
 0xd66   :  { %v1315_v25 = vsel %vm573_vm4, %v1314_v22, -inf }
 0xd67   :  { %1316 = vmax.xlane.f32.xlu1 %v1315_v25 }
 0xd6b   :  { %1288 = vmax.xlane.f32.xlu1 %v1287_v26 }
 0xdf4   :  { %v1317_v27 = vpop.xlane.xlu1 %1316 }
 0xdf5   :  { %v1318_v28 = vsub.f32 %v1314_v22, %v1317_v27 }
 0xdf7   :  { %v1319_v29 = vmul.f32 1.442695, %v1318_v28 }
 0xdf8   :  { %v1289_v3 = vpop.xlane.xlu1 %1288 }
 0xdf9   :  { %1873 = vpow2.f32 %v1319_v29  ;;  %v1290_v31 = vsub.f32 %v1283_v0, %v1289_v3 }
 0xdfb   :  { %v1291_v32 = vmul.f32 1.442695, %v1290_v31 }
 0xdfd   :  { %1875 = vpow2.f32 %v1291_v32 }
 0xe03   :  { %v1874_v30 = vpop.eup %1873 }
 0xe04   :  { %1322 = vrot.lane.b32.xlu0 %v1874_v30, %s1909_s4 }
 0xe07   :  { %v1876_v33 = vpop.eup %1875 }
 0xe08   :  { %v1293_v7 = vsel %vm561_vm7, %v1876_v33, 0.0 }
 0xe76   :  { %v1323_v6 = vpop.permute.xlu0 %1322 }
 0xe77   :  { %v1325_v5 = vsel %vm584_vm5, %v1323_v6, 0.0 }
 0xe78   :  { %1326 = vadd.xlane.f32.xlu1 %v1325_v5 }
 0xe7c   :  { %1294 = vadd.xlane.f32.xlu1 %v1293_v7 }
 0xf05   :  { %v1327_v9 = vpop.xlane.xlu1 %1326 }
 0xf06   :  { %1877 = vrcp.f32 %v1327_v9 }
 0xf09   :  { %v1295_v11 = vpop.xlane.xlu1 %1294 }
 0xf0a   :  { %1879 = vrcp.f32 %v1295_v11 }
 0xf10   :  { %v1878_v12 = vpop.eup %1877 }
 0xf11   :  { %v1329_v14 = vmul.f32 %v1878_v12, %v1874_v30 }
 0xf13   :  { %v1416_v35 = vrot.slane %v1329_v14, 1 }
 0xf14   :  { %v1880_v36 = vpop.eup %1879 }
 0xf15   :  { %v1297_v37 = vmul.f32 %v1880_v36, %v1876_v33  ;;  %1417 = vrot.lane.b32.xlu1 %v1416_v35, %s1909_s4 }
 0xf17   :  { %1766 = vmatmul.mubr.msk.f32.vlgmr.msra.gmra.mrb[18].mxu1 %vm389_vm2, %v1297_v37  ;;  %v1500_v38 = vsel %vm389_vm2, %v1297_v37, %v1416_v35 }
 0xf87   :  { %v1418_v39 = vpop.permute.xlu1 %1417 }
 0xf88   :  { %1771 = vmatmul.mubr.msk.f32.vlgmr.msra.gmra.mrb[18].mxu0 %vm303_vm3, %v1418_v39 }
 0xfea   :  { %v1411_v40 = vpop.f32.mrb[18].mxu1 }
 0xfeb   :  { %1493 = vrot.lane.b32.xlu0 %v1411_v40, %s1910_s1  ;;  %v1767_v41 = vpop.f32.mrb[19].mxu1 }
 0xfef   :  { %770 = vrot.lane.b32.xlu0 %v2142_v16, %s1910_s1  ;;  %v777_v16 = vsel %vm389_vm2, %v2119_v34, %v693_v24 }
0x105b   :  { %v1487_v42 = vpop.f32.mrb[18].mxu0 }
0x105c   :  { %1497 = vrot.lane.b32.xlu0 %v1487_v42, %s1911_s29  ;;  %v1772_v43 = vpop.f32.mrb[19].mxu0 }
0x105d   :  { %v1494_v44 = vpop.permute.xlu0 %1493 }
0x105e   :  { %v1501_v46 = vsel %vm778_vm10, %v1500_v38, %v1494_v44 }
0x1060   :  { %774 = vrot.lane.b32.xlu0 %v2136_v8, %s1911_s29 }
0x1061   :  { %v771_v45 = vpop.permute.xlu0 %770 }
0x1062   :  { %v779_v51 = vsel %vm778_vm10, %v777_v16, %v771_v45 }
0x10ce   :  { %v1498_v47 = vpop.permute.xlu0 %1497 }
0x10cf   :  { %v1502_v49 = vsel %vm780_vm11, %v1501_v46, %v1498_v47 }
0x10d0   :  { %v1503_v50 = vsel %vm782_vm12, %v1502_v49, 0.0 }
0x10d1   :  { %v1505_v8 = vrot.slane %v1503_v50, 7 }
0x10d2   :  { %v775_v52 = vpop.permute.xlu0 %774 }
0x10d3   :  { %v781_v53 = vsel %vm780_vm11, %v779_v51, %v775_v52 }
0x10d4   :  { %v783_v54 = vsel %vm782_vm12, %v781_v53, 0.0 }
0x10d5   :  { %v1508_v55 = vsel %vm1507_vm13, %v783_v54, %v1505_v8 }
0x10d6   :  { %1509 = vst [vmem:[#allocation2] sm:$0x3] %v1508_v55 }
0x10d7   :  { %1892 = shalt.err (!%p1889_p4)
}
0x10d8   :  { %s1893_s10 = scalar_lea.hbm %s2205_s5, 32 }
0x10d9   :  { %p1894_p5 = scmp.ne.s32.totalorder %s2205_s5, %s1893_s10  ;;  %p1897_p6 = scmp.lt.u32.totalorder %s1893_s10, %s2205_s5 }
0x10db   :  { %p1899_p7 = pnand %p1897_p6, %p1894_p5 }
0x10dd   :  { %1902 = shalt.err (!%p1899_p7)
}
0x10de   :  { %1519 = dma.vmem_to_hbm [thread:$0]  %s1517_s6, 32, %s2205_s5, [#allocation3]  }
0x10df   :  { %1903 = dma.done.wait [#allocation3], 32  }
0x10e0   :  { %1904 = vsyncadd [#allocation3], 4294967264 }
0x10e1   :  { %1523 = vsyncpa [#allocation3], 1 }

</bundles_post_ra>
